<compile_context>
chip_gen: v6e
topology: v6e:2x2x1
jax: 0.10.0
libtpu: 0.0.40
codegen_flags: <defaults>
</compile_context>

<pallas_src>
import math
import functools

import numpy as np
import jax
import jax.numpy as jnp
from jax.experimental import pallas as pl
from jax.experimental.pallas import tpu as pltpu

_K1, _K2 = 0.01, 0.03
_WIN_SIZE, _WIN_SIGMA = 11, 1.5
# standard MS-SSIM scale weights (pytorch_msssim defaults, 5 levels)
_MS_WEIGHTS = np.array([0.0448, 0.2856, 0.3001, 0.2363, 0.1333], np.float32)

_RED_LANES = 512          # lane width for the tiled reduction kernels
_RED_MAX_ROWS = 1024      # rows per reduction block (1024*512*4B = 2 MiB / operand)


# ----------------------------------------------------------------------------
# helpers (pure python / numpy glue)
# ----------------------------------------------------------------------------
def _gauss_1d(size=_WIN_SIZE, sigma=_WIN_SIGMA):
    coords = np.arange(size, dtype=np.float64) - size // 2
    g = np.exp(-(coords ** 2) / (2.0 * sigma ** 2))
    g = g / g.sum()
    return g.astype(np.float32)


def _conv_matrix(length, g):
    """A[(j+k), j] = g[k]: 'valid' cross-correlation along one axis as a matmul."""
    k = g.shape[0]
    lo = length - k + 1
    a = np.zeros((length, lo), np.float32)
    for j in range(lo):
        a[j:j + k, j] = g
    return a


def _pool_matrices(hl, wl):
    """Ph (hl/2, hl), Pw (wl, wl/2): Ph @ X @ Pw == avg_pool2d(X, kernel_size=2)."""
    ph = np.zeros((hl // 2, hl), np.float32)
    idx = np.arange(hl // 2)
    ph[idx, 2 * idx] = 0.5
    ph[idx, 2 * idx + 1] = 0.5
    pw = np.zeros((wl, wl // 2), np.float32)
    jdx = np.arange(wl // 2)
    pw[2 * jdx, jdx] = 0.5
    pw[2 * jdx + 1, jdx] = 0.5
    return ph, pw


def _round_up(v, m):
    return ((v + m - 1) // m) * m


def _reduction_layout(total):
    rows = max(1, -(-total // _RED_LANES))
    row_tile = min(_RED_MAX_ROWS, _round_up(rows, 8))
    rows = _round_up(rows, row_tile)
    return rows, row_tile


def _pad_flat(x, size, value):
    flat = x.reshape(-1)
    pad = size - flat.shape[0]
    if pad == 0:
        return flat
    return jnp.pad(flat, (0, pad), constant_values=value)


# ----------------------------------------------------------------------------
# Pallas kernels
# ----------------------------------------------------------------------------
def _msssim_pyramid_kernel(x_ref, y_ref, *refs, levels, data_range, clip_inputs):
    """Fused MS-SSIM pyramid for one (n, c) plane pair.

    refs = [GhT_0, Gw_0, ..., GhT_{L-1}, Gw_{L-1},
            Ph_0, Pw_0, ..., Ph_{L-2}, Pw_{L-2}, out_ref]
    Output row layout: lanes [0, L)  -> per-level ssim mean,
                       lanes [L, 2L) -> per-level cs mean.
    """
    mats = refs[:-1]
    out_ref = refs[-1]
    gh = [mats[2 * l] for l in range(levels)]
    gw = [mats[2 * l + 1] for l in range(levels)]
    ph = [mats[2 * levels + 2 * l] for l in range(levels - 1)]
    pw = [mats[2 * levels + 2 * l + 1] for l in range(levels - 1)]

    c1 = (_K1 * data_range) ** 2
    c2 = (_K2 * data_range) ** 2

    x = x_ref[0].astype(jnp.float32)   # (H, W) -- single cast, in-kernel
    y = y_ref[0].astype(jnp.float32)
    if clip_inputs:                    # fold the module-level clamp(0, 1) in here
        x = jnp.clip(x, 0.0, 1.0)
        y = jnp.clip(y, 0.0, 1.0)

    ssim_vals = []
    cs_vals = []
    for l in range(levels):
        a_h = gh[l][...]               # (Ho, H_l)
        a_w = gw[l][...]               # (W_l, Wo)
        hl = x.shape[0]
        aligned = (hl % 8) == 0        # static python decision per level

        def hfilt(rows, a_h=a_h):
            return jnp.dot(a_h, rows, preferred_element_type=jnp.float32)

        def wfilt(rows, a_w=a_w):
            return jnp.dot(rows, a_w, preferred_element_type=jnp.float32)

        stacked = None
        if aligned:
            # Batch all five separable filters into one lane-side matmul:
            # [x; y; x*x; y*y; x*y] @ Gw, then GhT @ each slice.
            stacked = jnp.concatenate([x, y, x * x, y * y, x * y], axis=0)  # (5*Hl, Wl)
            tw = wfilt(stacked)                                              # (5*Hl, Wo)
            mu1 = hfilt(tw[0 * hl:1 * hl])
            mu2 = hfilt(tw[1 * hl:2 * hl])
            ex2 = hfilt(tw[2 * hl:3 * hl])
            ey2 = hfilt(tw[3 * hl:4 * hl])
            exy = hfilt(tw[4 * hl:5 * hl])
        else:
            mu1 = hfilt(wfilt(x))
            mu2 = hfilt(wfilt(y))
            ex2 = hfilt(wfilt(x * x))
            ey2 = hfilt(wfilt(y * y))
            exy = hfilt(wfilt(x * y))

        mu1_sq = mu1 * mu1
        mu2_sq = mu2 * mu2
        mu1_mu2 = mu1 * mu2
        sigma1_sq = ex2 - mu1_sq
        sigma2_sq = ey2 - mu2_sq
        sigma12 = exy - mu1_mu2

        cs_map = (2.0 * sigma12 + c2) / (sigma1_sq + sigma2_sq + c2)
        ssim_map = ((2.0 * mu1_mu2 + c1) / (mu1_sq + mu2_sq + c1)) * cs_map

        ssim_vals.append(jnp.mean(ssim_map, keepdims=True))   # (1, 1)
        cs_vals.append(jnp.mean(cs_map, keepdims=True))       # (1, 1)

        if l < levels - 1:
            p_h = ph[l][...]           # (Hl//2, Hl)
            p_w = pw[l][...]           # (Wl, Wl//2)
            if aligned:
                xy_rows = stacked[:2 * hl]                     # [x; y] (2*Hl, Wl)
                tp = jnp.dot(xy_rows, p_w, preferred_element_type=jnp.float32)
                x = jnp.dot(p_h, tp[:hl], preferred_element_type=jnp.float32)
                y = jnp.dot(p_h, tp[hl:2 * hl], preferred_element_type=jnp.float32)
            else:
                x = jnp.dot(jnp.dot(p_h, x, preferred_element_type=jnp.float32),
                            p_w, preferred_element_type=jnp.float32)
                y = jnp.dot(jnp.dot(p_h, y, preferred_element_type=jnp.float32),
                            p_w, preferred_element_type=jnp.float32)

    # Build the lane-packed output row once and store it in a single write.
    lane = jax.lax.broadcasted_iota(jnp.int32, (1, 1, 2 * levels), 2)
    row = jnp.zeros((1, 1, 2 * levels), jnp.float32)
    for l in range(levels):
        row = jnp.where(lane == l, ssim_vals[l], row)
        row = jnp.where(lane == levels + l, cs_vals[l], row)
    out_ref[...] = row


def _mse_kernel(a_ref, b_ref, out_ref, acc_ref, *, inv_count, clip_inputs):
    @pl.when(pl.program_id(0) == 0)
    def _():
        acc_ref[...] = jnp.zeros_like(acc_ref)

    a = a_ref[...].astype(jnp.float32)
    b = b_ref[...].astype(jnp.float32)
    if clip_inputs:
        a = jnp.clip(a, 0.0, 1.0)
        b = jnp.clip(b, 0.0, 1.0)
    d = a - b
    acc_ref[...] += jnp.sum(d * d, keepdims=True)

    @pl.when(pl.program_id(0) == pl.num_programs(0) - 1)
    def _():
        out_ref[...] = acc_ref[...] * inv_count


def _bpp_kernel(l_ref, out_ref, acc_ref, *, scale):
    @pl.when(pl.program_id(0) == 0)
    def _():
        acc_ref[...] = jnp.zeros_like(acc_ref)

    acc_ref[...] += jnp.sum(jnp.log(l_ref[...].astype(jnp.float32)), keepdims=True)

    @pl.when(pl.program_id(0) == pl.num_programs(0) - 1)
    def _():
        out_ref[...] = acc_ref[...] * scale


# ----------------------------------------------------------------------------
# wrappers around pallas_call
# ----------------------------------------------------------------------------
def multi_scale_ssim(x, y, data_range=1.0, clip_inputs=False):
    """pytorch_msssim-style MS-SSIM, size_average=True (scalar)."""
    levels = int(_MS_WEIGHTS.shape[0])
    n, c, h, w = x.shape
    nc = n * c
    pool_factor = 1 << (levels - 1)
    assert h % pool_factor == 0 and w % pool_factor == 0, \
        "spatial dims must be divisible by 2**(levels-1)"
    assert (h // pool_factor) >= _WIN_SIZE and (w // pool_factor) >= _WIN_SIZE, \
        "image too small for 5-level MS-SSIM with an 11-tap window"

    xf = x.reshape(nc, h, w)   # no wrapper-side dtype cast / clip (done in-kernel)
    yf = y.reshape(nc, h, w)

    g = _gauss_1d()
    mats = []
    for l in range(levels):
        hl, wl = h >> l, w >> l
        mats.append(jnp.asarray(np.ascontiguousarray(_conv_matrix(hl, g).T)))  # (Ho, Hl)
        mats.append(jnp.asarray(_conv_matrix(wl, g)))                          # (Wl, Wo)
    for l in range(levels - 1):
        hl, wl = h >> l, w >> l
        ph, pw = _pool_matrices(hl, wl)
        mats.append(jnp.asarray(ph))
        mats.append(jnp.asarray(pw))

    mat_specs = [pl.BlockSpec(m.shape, lambda i: (0, 0)) for m in mats]

    kernel = functools.partial(_msssim_pyramid_kernel,
                               levels=levels, data_range=float(data_range),
                               clip_inputs=clip_inputs)
    res = pl.pallas_call(
        kernel,
        out_shape=jax.ShapeDtypeStruct((nc, 1, 2 * levels), jnp.float32),
        grid=(nc,),
        in_specs=[pl.BlockSpec((1, h, w), lambda i: (i, 0, 0)),
                  pl.BlockSpec((1, h, w), lambda i: (i, 0, 0))] + mat_specs,
        out_specs=pl.BlockSpec((1, 1, 2 * levels), lambda i: (i, 0, 0)),
        compiler_params=pltpu.CompilerParams(
            dimension_semantics=("parallel",)),   # v7x: shard planes across 2 TCs
    )(xf, yf, *mats)

    res = res.reshape(nc, 2 * levels)
    w_arr = jnp.asarray(_MS_WEIGHTS)
    ssim_last = jnp.maximum(res[:, levels - 1], 0.0)            # (nc,)
    mcs = jnp.maximum(res[:, levels:2 * levels - 1], 0.0)       # (nc, levels-1)
    terms = jnp.concatenate([mcs, ssim_last[:, None]], axis=1)  # (nc, levels)
    ms = jnp.prod(terms ** w_arr[None, :], axis=1)
    return ms.mean()


def mse_loss(a, b, clip_inputs=False):
    total = int(np.prod(a.shape))
    rows, row_tile = _reduction_layout(total)
    af = _pad_flat(a, rows * _RED_LANES, 0.0).reshape(rows, _RED_LANES)
    bf = _pad_flat(b, rows * _RED_LANES, 0.0).reshape(rows, _RED_LANES)
    out = pl.pallas_call(
        functools.partial(_mse_kernel, inv_count=1.0 / float(total),
                          clip_inputs=clip_inputs),
        out_shape=jax.ShapeDtypeStruct((1, 1), jnp.float32),
        grid=(rows // row_tile,),
        in_specs=[pl.BlockSpec((row_tile, _RED_LANES), lambda i: (i, 0)),
                  pl.BlockSpec((row_tile, _RED_LANES), lambda i: (i, 0))],
        out_specs=pl.BlockSpec((1, 1), lambda i: (0, 0)),
        scratch_shapes=[pltpu.VMEM((1, 1), jnp.float32)],
        compiler_params=pltpu.CompilerParams(dimension_semantics=("arbitrary",)),
    )(af, bf)
    return out[0, 0]


def _likelihoods_bpp(likelihoods, num_pixels):
    total = int(np.prod(likelihoods.shape))
    rows, row_tile = _reduction_layout(total)
    # pad with 1.0 so log(pad) == 0 contributes nothing to the sum
    lf = _pad_flat(likelihoods, rows * _RED_LANES, 1.0).reshape(rows, _RED_LANES)
    scale = 1.0 / (-math.log(2.0) * float(num_pixels))
    out = pl.pallas_call(
        functools.partial(_bpp_kernel, scale=scale),
        out_shape=jax.ShapeDtypeStruct((1, 1), jnp.float32),
        grid=(rows // row_tile,),
        in_specs=[pl.BlockSpec((row_tile, _RED_LANES), lambda i: (i, 0))],
        out_specs=pl.BlockSpec((1, 1), lambda i: (0, 0)),
        scratch_shapes=[pltpu.VMEM((1, 1), jnp.float32)],
        compiler_params=pltpu.CompilerParams(dimension_semantics=("arbitrary",)),
    )(lf)
    return out[0, 0]


def recursive_likelihoods_sum(likelihoods, num_pixels):
    if isinstance(likelihoods, jax.Array):
        return _likelihoods_bpp(likelihoods, num_pixels)
    elif isinstance(likelihoods, list):
        return sum(recursive_likelihoods_sum(v, num_pixels) for v in likelihoods)
    elif isinstance(likelihoods, dict):
        return sum(recursive_likelihoods_sum(v, num_pixels) for v in likelihoods.values())
    return jnp.float32(0.0)


# ----------------------------------------------------------------------------
# MS_SSIM_Loss module equivalent
# ----------------------------------------------------------------------------
class Args:
    lmbda = 8.73
    dep_lmbda = 1.0
    view_weights = [1.0, 0.8]
    training_sample_length = 2


class MSSSIMLoss:
    def __call__(self, output, view_main, args, is_test=False, view_index=0,
                 is_only_decode_test=False):
        x_main, depth_main = view_main['x_main'], view_main['depth_main']
        x_main_hat, depth_main_hat = output['x_hat'], output['depth_hat']
        # clamp(0,1) is fused into the kernels (clip_inputs=True) instead of a
        # separate full-image HBM pass here.
        view_index = view_index % args.training_sample_length
        n, _, h, w = x_main.shape
        num_pixels = n * h * w
        out = {}
        if not is_only_decode_test:
            out['bpp_img_y'] = recursive_likelihoods_sum(output['x_likelihoods']['y'], num_pixels)
            out['bpp_img_z'] = recursive_likelihoods_sum(output['x_likelihoods']['z'], num_pixels)
            out['bpp_dep_y'] = recursive_likelihoods_sum(output['depth_likelihoods']['y'], num_pixels)
            out['bpp_dep_z'] = recursive_likelihoods_sum(output['depth_likelihoods']['z'], num_pixels)
            out['bpp_img_loss'] = out['bpp_img_y'] + out['bpp_img_z']
            out['bpp_dep_loss'] = out['bpp_dep_y'] + out['bpp_dep_z']
            out['bpp_loss'] = out['bpp_img_loss'] + out['bpp_dep_loss']
            out['ms_ssim_loss_img'] = 1.0 - multi_scale_ssim(
                x_main_hat, x_main, data_range=1.0, clip_inputs=True)
            if depth_main_hat is not None:
                out['mse_dep'] = mse_loss(depth_main_hat, depth_main)
            else:
                out['mse_dep'] = jnp.float32(0.0)
            if not is_test:
                out['loss'] = (args.view_weights[view_index]
                               * (args.lmbda * out['ms_ssim_loss_img']
                                  + args.dep_lmbda * out['mse_dep'])
                               + out['bpp_loss'])
            else:
                out['loss'] = (args.lmbda * out['ms_ssim_loss_img']
                               + args.dep_lmbda * out['mse_dep'] + out['bpp_loss'])
        if is_test or is_only_decode_test:
            # TODO(synk): exact psnr() reduction convention (per-image vs global mean)
            # is unspecified in the reference; using global-MSE PSNR with the Pallas
            # MSE reduction kernel (clamp fused in-kernel).
            mse_img = mse_loss(x_main_hat, x_main, clip_inputs=True)
            out['psnr'] = 10.0 * jnp.log10(1.0 / (mse_img + 1e-10))
            if 'ms_ssim_loss_img' in out:
                # reuse the already-computed pyramid instead of re-running it
                out['ms-ssim'] = 1.0 - out['ms_ssim_loss_img']
            else:
                out['ms-ssim'] = multi_scale_ssim(
                    x_main_hat, x_main, data_range=1.0, clip_inputs=True)
        return out


# ----------------------------------------------------------------------------
if __name__ == "__main__":
    key = jax.random.PRNGKey(0)
    ks = jax.random.split(key, 8)

    # spatial 192 so all 5 default MS-SSIM scales are valid (deepest scale 12 >= 11)
    n, c, h, w = 2, 3, 192, 192
    x_main = jax.random.uniform(ks[0], (n, c, h, w), jnp.float32)
    x_hat = x_main + 0.05 * jax.random.normal(ks[1], (n, c, h, w), jnp.float32)
    depth = jax.random.uniform(ks[2], (n, 1, h, w), jnp.float32)
    depth_hat = depth + 0.01 * jax.random.normal(ks[3], (n, 1, h, w), jnp.float32)

    def lik(k, shape):
        return jax.random.uniform(k, shape, jnp.float32, 1e-3, 1.0)

    output = {
        'x_hat': x_hat,
        'depth_hat': depth_hat,
        'x_likelihoods': {'y': lik(ks[4], (n, 8, h // 16, w // 16)),
                          'z': lik(ks[5], (n, 8, h // 64, w // 64))},
        'depth_likelihoods': {'y': lik(ks[6], (n, 8, h // 16, w // 16)),
                              'z': lik(ks[7], (n, 8, h // 64, w // 64))},
    }
    view_main = {'x_main': x_main, 'depth_main': depth}

    loss_mod = MSSSIMLoss()
    out_train = loss_mod(output, view_main, Args(), is_test=False, view_index=0)
    jax.block_until_ready(out_train)
    out_test = loss_mod(output, view_main, Args(), is_test=True, view_index=1)
    jax.block_until_ready(out_test)
    print("KERNEL_OK")
</pallas_src>

<mosaic_0001>
module attributes {stable_mosaic.version = 11 : i64} {
  func.func @_bpp_kernel(%arg0: i32, %arg1: memref<8x512xf32, #tpu.memory_space<vmem>>, %arg2: memref<1x1xf32, #tpu.memory_space<vmem>>, %arg3: memref<1x1xf32, #tpu.memory_space<vmem>>) attributes {dimension_semantics = [#tpu.dimension_semantics<arbitrary>], iteration_bounds = array<i64: 1>, scalar_prefetch = 0 : i64, scratch_operands = 1 : i64, tpu.core_type = #tpu.core_type<tc>, window_params = [{transform_indices = @transform_0, window_bounds = array<i64: 8, 512>}, {pipeline_mode = #tpu.pipeline_mode<synchronous>, transform_indices = @transform_1, window_bounds = array<i64: 1, 1>}]} {
    %c0_i32 = arith.constant 0 : i32
    %0 = arith.cmpi eq, %arg0, %c0_i32 : i32
    %1 = arith.extui %0 : i1 to i32
    %c0_i32_0 = arith.constant 0 : i32
    %2 = arith.cmpi ne, %1, %c0_i32_0 : i32
    scf.if %2 {
      %cst_8 = arith.constant 0.000000e+00 : f32
      %16 = vector.broadcast %cst_8 : f32 to vector<1x1xf32>
      %c0_9 = arith.constant 0 : index
      %c0_10 = arith.constant 0 : index
      %17 = vector.load %arg3[%c0_9, %c0_10] : memref<1x1xf32, #tpu.memory_space<vmem>>, vector<1x1xf32>
      tpu.vector_store %arg3[%c0_9, %c0_10], %16 {strides = array<i32>} : memref<1x1xf32, #tpu.memory_space<vmem>>, vector<1x1xf32>,
    } else {
    }
    %c0 = arith.constant 0 : index
    %c0_1 = arith.constant 0 : index
    %3 = vector.load %arg3[%c0, %c0_1] : memref<1x1xf32, #tpu.memory_space<vmem>>, vector<1x1xf32>
    %c0_2 = arith.constant 0 : index
    %c0_3 = arith.constant 0 : index
    %4 = vector.load %arg1[%c0_2, %c0_3] : memref<8x512xf32, #tpu.memory_space<vmem>>, vector<8x512xf32>
    %5 = math.log %4 : vector<8x512xf32>
    %6 = vector.shape_cast %5 : vector<8x512xf32> to vector<1x8x512xf32>
    %cst = arith.constant dense<0.000000e+00> : vector<1xf32>
    %7 = vector.multi_reduction <add>, %6, %cst [1, 2] : vector<1x8x512xf32> to vector<1xf32>
    %8 = vector.shape_cast %7 : vector<1xf32> to vector<1x1x1xf32>
    %9 = vector.extract %8[0, 0, 0] : f32 from vector<1x1x1xf32>
    %10 = vector.broadcast %9 : f32 to vector<1x1xf32>
    %11 = arith.addf %3, %10 : vector<1x1xf32>
    %c0_4 = arith.constant 0 : index
    %c0_5 = arith.constant 0 : index
    %12 = vector.load %arg3[%c0_4, %c0_5] : memref<1x1xf32, #tpu.memory_space<vmem>>, vector<1x1xf32>
    tpu.vector_store %arg3[%c0_4, %c0_5], %11 {strides = array<i32>} : memref<1x1xf32, #tpu.memory_space<vmem>>, vector<1x1xf32>,
    %c0_i32_6 = arith.constant 0 : i32
    %13 = arith.cmpi eq, %arg0, %c0_i32_6 : i32
    %14 = arith.extui %13 : i1 to i32
    %c0_i32_7 = arith.constant 0 : i32
    %15 = arith.cmpi ne, %14, %c0_i32_7 : i32
    scf.if %15 {
      %c0_8 = arith.constant 0 : index
      %c0_9 = arith.constant 0 : index
      %16 = vector.load %arg3[%c0_8, %c0_9] : memref<1x1xf32, #tpu.memory_space<vmem>>, vector<1x1xf32>
      %cst_10 = arith.constant -1.9567804E-5 : f32
      %17 = vector.broadcast %cst_10 : f32 to vector<1x1xf32>
      %18 = arith.mulf %16, %17 : vector<1x1xf32>
      %c0_11 = arith.constant 0 : index
      %c0_12 = arith.constant 0 : index
      %19 = vector.load %arg2[%c0_11, %c0_12] : memref<1x1xf32, #tpu.memory_space<vmem>>, vector<1x1xf32>
      tpu.vector_store %arg2[%c0_11, %c0_12], %18 {strides = array<i32>} : memref<1x1xf32, #tpu.memory_space<vmem>>, vector<1x1xf32>,
    } else {
    }
    return
  }
  func.func @transform_0(%arg0: i32) -> (i32, i32) {
    %c0_i32 = arith.constant 0 : i32
    %c0_i32_0 = arith.constant 0 : i32
    return %arg0, %c0_i32 : i32, i32
  }
  func.func @transform_1(%arg0: i32) -> (i32, i32) {
    %c0_i32 = arith.constant 0 : i32
    %c0_i32_0 = arith.constant 0 : i32
    %c0_i32_1 = arith.constant 0 : i32
    return %c0_i32, %c0_i32_0 : i32, i32
  }
}

</mosaic_0001>

<bundles_post_ra>
// kernel: tpu_custom_call.1
= control target key start
LH: loop header
LB: loop body
LE: loop exit
PB: predicated region body
PF: predicated region fallthrough
CT: control target
= control target key end

     0   :  { %6 = vsyncpa [#allocation4], 0  ;;  %s156_s0 = inlined_call_operand.hbm [shape: f32[8,512], index: 0, kind: input, shape index: {}]   ;;  %s157_s1 = inlined_call_operand.hbm [shape: f32[1,1], index: 1, kind: output, shape index: {}]  }
   0x1   :  { %7 = vsyncpa [#allocation5], 0  ;;  %s134_s6 = smov [#allocation3]  }
   0x2   :  { %s14_s7 = sshll.u32 %s134_s6, 4  ;;  %s15_s7 = int_to_ptr.vmem [resolvable:$true] %s14_s7 }
   0x3   :  { %s98_s8 = scalar_lea.vmem %s15_s7, 512  ;;  %p103_p1 = scmp.lt.s32.totalorder %s15_s7, %s15_s7 }
   0x4   :  { %p99_p0 = scmp.ne.s32.totalorder %s15_s7, %s98_s8  ;;  %p104_p2 = scmp.lt.s32.totalorder %s98_s8, %s98_s8 }
   0x6   :  { %p105_p3 = por %p104_p2, %p103_p1 }
   0x8   :  { %p106_p4 = pnand %p105_p3, %p99_p0 }
   0xa   :  { %109 = shalt.err (!%p106_p4)
}
   0xb   :  { %17 = dma.hbm_to_vmem [thread:$0]  %s156_s0, 512, %s15_s7, [#allocation4]  }
   0xc   :  { %130 = dma.done.wait [#allocation4], 512  }
   0xd   :  { %131 = vsyncadd [#allocation4], 4294966784  ;;  %v28_v0 = vld [vmem:[#allocation3] sm:$0xff]  ;;  %v29_v1 = vld [vmem:[#allocation3 + $0x8] sm:$0xff]  ;;  %vm25_vm0 = vcmask 0   ;;  %v135_v15 = vmov 0.0  }
   0xe   :  { %v30_v2 = vld [vmem:[#allocation3 + $0x10] sm:$0xff]  ;;  %v31_v3 = vld [vmem:[#allocation3 + $0x18] sm:$0xff]  ;;  %82 = vlog2.f32 %v28_v0  ;;  %26 = vst.msk [vmem:[#allocation2] sm:$0x1] %vm25_vm0, %v135_v15  ;;  %s136_s11 = smov [#allocation6]  }
   0xf   :  { %84 = vlog2.f32 %v29_v1  ;;  %s68_s12 = sshll.u32 %s136_s11, 4  ;;  %s69_s12 = int_to_ptr.vmem [resolvable:$true] %s68_s12 }
  0x10   :  { %86 = vlog2.f32 %v30_v2  ;;  %s110_s13 = scalar_lea.vmem %s69_s12, 16  ;;  %s114_s14 = scalar_lea.vmem %s69_s12, 32 }
  0x11   :  { %88 = vlog2.f32 %v31_v3  ;;  %p111_p5 = scmp.ne.s32.totalorder %s69_s12, %s110_s13  ;;  %p115_p6 = scmp.lt.s32.totalorder %s69_s12, %s69_s12 }
  0x12   :  { %p116_p7 = scmp.lt.s32.totalorder %s114_s14, %s110_s13 }
  0x14   :  { %p117_p8 = por %p116_p7, %p115_p6 }
  0x15   :  { %v27_v23 = vld [vmem:[#allocation2] sm:$0x1] }
  0x16   :  { %p118_p9 = pnand %p117_p8, %p111_p5 }
  0x1b   :  { %v83_v4 = vpop.eup %82 }
  0x1c   :  { %v85_v5 = vpop.eup %84  ;;  %v33_v6 = vmul.f32 0.6931472, %v83_v4 }
  0x1d   :  { %v87_v7 = vpop.eup %86  ;;  %v35_v8 = vmul.f32 0.6931472, %v85_v5 }
  0x1e   :  { %v89_v9 = vpop.eup %88  ;;  %v37_v10 = vmul.f32 0.6931472, %v87_v7 }
  0x1f   :  { %v39_v11 = vmul.f32 0.6931472, %v89_v9  ;;  %v40_v12 = vadd.f32 %v35_v8, %v33_v6 }
  0x21   :  { %v41_v13 = vadd.f32 %v40_v12, %v37_v10 }
  0x23   :  { %v42_v14 = vadd.f32 %v41_v13, %v39_v11 }
  0x25   :  { %43 = vadd.xlane.f32.xlu0 %v42_v14 }
  0xae   :  { %v44_v16 = vpop.xlane.xlu0 %43 }
  0xaf   :  { %v45_v17 = vrot.slane %v44_v16, 4 }
  0xb1   :  { %v46_v18 = vadd.f32 %v45_v17, %v44_v16 }
  0xb3   :  { %v47_v19 = vrot.slane %v46_v18, 2 }
  0xb5   :  { %v48_v20 = vadd.f32 %v47_v19, %v46_v18 }
  0xb7   :  { %v49_v21 = vrot.slane %v48_v20, 1 }
  0xb9   :  { %v50_v22 = vadd.f32 %v49_v21, %v48_v20 }
  0xbb   :  { %77 = vpush %v50_v22 }
  0xec   :  { %s78_s0 = spop %77 }
  0xed   :  { %v52_v24 = vstv %s78_s0 }
  0xee   :  { %v53_v25 = vadd.f32 %v52_v24, %v27_v23 }
  0xf0   :  { %55 = vst.msk [vmem:[#allocation2] sm:$0x1] %vm25_vm0, %v53_v25 }
  0xf7   :  { %v59_v26 = vld [vmem:[#allocation2] sm:$0x1] }
  0xf8   :  { %v60_v27 = vmul.f32 -1.9567804e-05, %v59_v26 }
  0xfa   :  { %61 = vst.msk [vmem:[#allocation6] sm:$0x1] %vm25_vm0, %v60_v27 }
  0xfb   :  { %121 = shalt.err (!%p118_p9)
}
  0xfc   :  { %71 = dma.vmem_to_hbm [thread:$0]  %s69_s12, 16, %s157_s1, [#allocation5]  }
  0xfd   :  { %132 = dma.done.wait [#allocation5], 16  }
  0xfe   :  { %133 = vsyncadd [#allocation5], 4294967280 }
  0xff   :  { %75 = vsyncpa [#allocation4], 1 }
 0x100   :  { %76 = vsyncpa [#allocation5], 1 }

</bundles_post_ra>
